<compile_context>
chip_gen: v7x
topology: tpu7x:2x2x1
jax: 0.10.0
libtpu: 0.0.40
codegen_flags: <defaults>
</compile_context>

<pallas_src>
import jax
import jax.numpy as jnp
from jax.experimental import pallas as pl
from jax.experimental.pallas import tpu as pltpu


def clf_kernel(x_ref, m_ref, h0_ref, w_ih_ref, w_hh_ref, b_rnn_ref,
               w1_ref, b1_ref, w2_ref, b2_ref, out_ref, h_scr):
    """One grid step = one time-chunk of the tanh-RNN recurrence (+ head on last chunk).

    x_ref  : (1, Tc*B, E) bf16  time-major embeddings for this chunk (row = t*B + b)
    m_ref  : (1, Tc*B, 1) f32   packed-sequence mask (1.0 while t < length else 0.0)
    h_scr  : (B, H)       f32   hidden state carried across grid steps (VMEM scratch)
    out_ref: (B, 128)     f32   lane-dense logits slab (cols >= 2 are zero padding)
    """
    c = pl.program_id(0)

    @pl.when(c == 0)
    def _init():
        h_scr[...] = h0_ref[...]

    B, H = h_scr.shape
    steps = m_ref.shape[1] // B            # Tc (static)

    # Hoisted non-recurrent input projection: one MXU pass for the whole chunk,
    # bias broadcast + added once, outside the serial recurrence.
    xw = (jnp.dot(x_ref[0], w_ih_ref[...], preferred_element_type=jnp.float32)
          + b_rnn_ref[...])                # (Tc*B, H) f32
    m = m_ref[0]                           # (Tc*B, 1) f32
    w_hh = w_hh_ref[...]                   # (H, H) bf16

    h = h_scr[...]                         # (B, H) f32
    # Fully-unrolled short recurrence: only h @ W_hh sits on the serial path.
    for t in range(steps):
        h_new = jnp.tanh(
            jnp.dot(h.astype(w_hh.dtype), w_hh,
                    preferred_element_type=jnp.float32)
            + xw[t * B:(t + 1) * B])
        mt = m[t * B:(t + 1) * B]          # (B, 1)
        h = h + mt * (h_new - h)           # packed-sequence final-hidden semantics
    h_scr[...] = h

    # Classifier head: fc1 -> relu -> fc2 (lane-dense), only after the last chunk.
    @pl.when(c == pl.num_programs(0) - 1)
    def _head():
        z = (jnp.dot(h.astype(w1_ref.dtype), w1_ref[...],
                     preferred_element_type=jnp.float32) + b1_ref[...])
        z = jnp.maximum(z, 0.0)
        out_ref[...] = (jnp.dot(z.astype(w2_ref.dtype), w2_ref[...],
                                preferred_element_type=jnp.float32)
                        + b2_ref[...])


def init_params(key, vocab_size, emb_dim, hidden_dim, n_classes=2):
    ks = jax.random.split(key, 6)
    emb = jax.random.normal(ks[0], (vocab_size, emb_dim), jnp.float32) * 0.1
    emb = emb.at[0].set(0.0)  # padding_idx=0
    w_ih = jax.random.normal(ks[1], (emb_dim, hidden_dim), jnp.float32) * 0.1
    w_hh = jax.random.normal(ks[2], (hidden_dim, hidden_dim), jnp.float32) * 0.1
    b_rnn = jax.random.normal(ks[3], (1, hidden_dim), jnp.float32) * 0.01  # b_ih + b_hh
    w1 = jax.random.normal(ks[4], (hidden_dim, 128), jnp.float32) * 0.1
    b1 = jnp.zeros((1, 128), jnp.float32)
    w2 = jax.random.normal(ks[5], (128, n_classes), jnp.float32) * 0.1
    b2 = jnp.zeros((1, n_classes), jnp.float32)
    return dict(emb=emb, w_ih=w_ih, w_hh=w_hh, b_rnn=b_rnn, w1=w1, b1=b1, w2=w2, b2=b2)


def clf_forward(params, a_tok, a_len, b_tok, b_len, h0, *, chunk=8):
    B, Ta = a_tok.shape
    Tb = b_tok.shape[1]
    E = params["w_ih"].shape[0]
    H = params["w_hh"].shape[0]
    n_cls = params["w2"].shape[1]

    # ---- glue: data-dependent embedding gather stays in XLA --------------------------
    # time-major gather straight into bf16 (no f32 (T,B,E) transpose round-trip).
    # TODO(synk): at production sizes, fuse this gather into the kernel via
    # scalar-prefetched token ids + manual row DMA instead of materializing (T,B,E).
    emb_bf16 = params["emb"].astype(jnp.bfloat16)
    tok = jnp.concatenate([a_tok, b_tok], axis=1).T            # (T, B) time-major
    x = emb_bf16[tok]                                          # (T, B, E) bf16

    # packed-sequence mask: 1.0 while the (sub)sequence is still valid, else 0.0
    ma = jnp.arange(Ta)[:, None] < a_len[None, :]
    mb = jnp.arange(Tb)[:, None] < b_len[None, :]
    mask = jnp.concatenate([ma, mb], axis=0).astype(jnp.float32)[..., None]  # (T, B, 1)

    # pad time to a multiple of the chunk size (mask=0 -> hidden state untouched)
    T = Ta + Tb
    C = (T + chunk - 1) // chunk
    pad = C * chunk - T
    if pad:
        x = jnp.concatenate([x, jnp.zeros((pad, B, E), x.dtype)], axis=0)
        mask = jnp.concatenate([mask, jnp.zeros((pad, B, 1), mask.dtype)], axis=0)
    x = x.reshape(C, chunk * B, E)          # row t*B + b inside each chunk
    mask = mask.reshape(C, chunk * B, 1)

    # lane-dense classifier output slab: zero-pad fc2 to 128 output lanes
    w2p = jnp.zeros((128, 128), jnp.float32).at[:, :n_cls].set(params["w2"])
    b2p = jnp.zeros((1, 128), jnp.float32).at[:, :n_cls].set(params["b2"])

    def resident(shape):  # whole-array operand, same block every grid step
        return pl.BlockSpec(shape, lambda c: (0,) * len(shape))

    out = pl.pallas_call(
        clf_kernel,
        out_shape=jax.ShapeDtypeStruct((B, 128), jnp.float32),
        grid_spec=pltpu.PrefetchScalarGridSpec(
            num_scalar_prefetch=0,
            grid=(C,),
            in_specs=[
                pl.BlockSpec((1, chunk * B, E), lambda c: (c, 0, 0)),  # streamed embeddings
                pl.BlockSpec((1, chunk * B, 1), lambda c: (c, 0, 0)),  # streamed mask
                resident((B, H)),          # h0
                resident((E, H)),          # W_ih
                resident((H, H)),          # W_hh
                resident((1, H)),          # b_ih + b_hh
                resident((H, 128)),        # W_fc1
                resident((1, 128)),        # b_fc1
                resident((128, 128)),      # W_fc2 (lane-padded)
                resident((1, 128)),        # b_fc2 (lane-padded)
            ],
            out_specs=pl.BlockSpec((B, 128), lambda c: (0, 0)),
            scratch_shapes=[pltpu.VMEM((B, H), jnp.float32)],   # carried hidden state
        ),
        compiler_params=pltpu.CompilerParams(
            dimension_semantics=("arbitrary",),   # time chunks form a serial recurrence
            vmem_limit_bytes=32 * 1024 * 1024,    # explicit budget; fits v7x's 64 MiB VMEM
        ),
    )(x, mask,
      h0.astype(jnp.float32),
      params["w_ih"].astype(jnp.bfloat16),
      params["w_hh"].astype(jnp.bfloat16),
      params["b_rnn"],
      params["w1"].astype(jnp.bfloat16),
      params["b1"],
      w2p.astype(jnp.bfloat16),
      b2p)
    return out[:, :n_cls]   # slice the lane-dense slab outside the kernel


def clf_reference(params, a_tok, a_len, b_tok, b_len, h0):
    """Pure-JAX f32 reference with PyTorch packed-RNN (final hidden) semantics."""
    def run(tok, lens, h):
        x = params["emb"][tok]                                  # (B, T, E)
        for t in range(tok.shape[1]):
            h_new = jnp.tanh(x[:, t] @ params["w_ih"] + h @ params["w_hh"]
                             + params["b_rnn"])
            h = jnp.where((t < lens)[:, None], h_new, h)
        return h
    h = run(a_tok, a_len, h0)
    h = run(b_tok, b_len, h)                                    # hidden carried a -> b
    z = jnp.maximum(h @ params["w1"] + params["b1"], 0.0)
    return z @ params["w2"] + params["b2"]


if __name__ == "__main__":
    vocab_size, emb_dim, hidden_dim = 50, 16, 32
    bs, seq_a, seq_b = 2, 8, 8

    key = jax.random.PRNGKey(0)
    kp, ka, kb, kh = jax.random.split(key, 4)
    params = init_params(kp, vocab_size, emb_dim, hidden_dim)

    # token ids in [1, vocab) for valid positions, 0 (padding) after lengths
    a_lengths = jnp.array([8, 5], dtype=jnp.int32)
    b_lengths = jnp.array([6, 8], dtype=jnp.int32)
    a_tok = jax.random.randint(ka, (bs, seq_a), 1, vocab_size, dtype=jnp.int32)
    b_tok = jax.random.randint(kb, (bs, seq_b), 1, vocab_size, dtype=jnp.int32)
    a_tok = jnp.where(jnp.arange(seq_a)[None, :] < a_lengths[:, None], a_tok, 0)
    b_tok = jnp.where(jnp.arange(seq_b)[None, :] < b_lengths[:, None], b_tok, 0)

    # h_0 = torch.rand(num_layers*dirs=1, bs, hidden) -> here (bs, hidden)
    h0 = jax.random.uniform(kh, (bs, hidden_dim), jnp.float32)

    out = clf_forward(params, a_tok, a_lengths, b_tok, b_lengths, h0)
    jax.block_until_ready(out)
    assert out.shape == (bs, 2) and out.dtype == jnp.float32

    ref = clf_reference(params, a_tok, a_lengths, b_tok, b_lengths, h0)
    assert float(jnp.max(jnp.abs(out - ref))) < 5e-2  # bf16-operand tolerance

    print("KERNEL_OK")
</pallas_src>

<mosaic_0001>
module attributes {stable_mosaic.version = 11 : i64} {
  func.func @clf_kernel(%arg0: i32, %arg1: memref<1x16x16xbf16, #tpu.memory_space<vmem>>, %arg2: memref<1x16x1xf32, #tpu.memory_space<vmem>>, %arg3: memref<2x32xf32, #tpu.memory_space<vmem>>, %arg4: memref<16x32xbf16, #tpu.memory_space<vmem>>, %arg5: memref<32x32xbf16, #tpu.memory_space<vmem>>, %arg6: memref<1x32xf32, #tpu.memory_space<vmem>>, %arg7: memref<32x128xbf16, #tpu.memory_space<vmem>>, %arg8: memref<1x128xf32, #tpu.memory_space<vmem>>, %arg9: memref<128x128xbf16, #tpu.memory_space<vmem>>, %arg10: memref<1x128xf32, #tpu.memory_space<vmem>>, %arg11: memref<2x128xf32, #tpu.memory_space<vmem>>, %arg12: memref<2x32xf32, #tpu.memory_space<vmem>>) attributes {dimension_semantics = [#tpu.dimension_semantics<arbitrary>], iteration_bounds = array<i64: 2>, scalar_prefetch = 0 : i64, scratch_operands = 1 : i64, tpu.core_type = #tpu.core_type<tc>, window_params = [{transform_indices = @transform_0, window_bounds = array<i64: 1, 16, 16>}, {transform_indices = @transform_1, window_bounds = array<i64: 1, 16, 1>}, {pipeline_mode = #tpu.pipeline_mode<synchronous>, transform_indices = @transform_2, window_bounds = array<i64: 2, 32>}, {pipeline_mode = #tpu.pipeline_mode<synchronous>, transform_indices = @transform_3, window_bounds = array<i64: 16, 32>}, {pipeline_mode = #tpu.pipeline_mode<synchronous>, transform_indices = @transform_4, window_bounds = array<i64: 32, 32>}, {pipeline_mode = #tpu.pipeline_mode<synchronous>, transform_indices = @transform_5, window_bounds = array<i64: 1, 32>}, {pipeline_mode = #tpu.pipeline_mode<synchronous>, transform_indices = @transform_6, window_bounds = array<i64: 32, 128>}, {pipeline_mode = #tpu.pipeline_mode<synchronous>, transform_indices = @transform_7, window_bounds = array<i64: 1, 128>}, {pipeline_mode = #tpu.pipeline_mode<synchronous>, transform_indices = @transform_8, window_bounds = array<i64: 128, 128>}, {pipeline_mode = #tpu.pipeline_mode<synchronous>, transform_indices = @transform_9, window_bounds = array<i64: 1, 128>}, {pipeline_mode = #tpu.pipeline_mode<synchronous>, transform_indices = @transform_10, window_bounds = array<i64: 2, 128>}]} {
    %c0_i32 = arith.constant 0 : i32
    %0 = arith.cmpi eq, %arg0, %c0_i32 : i32
    %1 = arith.extui %0 : i1 to i32
    %c0_i32_0 = arith.constant 0 : i32
    %2 = arith.cmpi ne, %1, %c0_i32_0 : i32
    scf.if %2 {
      %c0_25 = arith.constant 0 : index
      %c0_26 = arith.constant 0 : index
      %98 = vector.load %arg3[%c0_25, %c0_26] : memref<2x32xf32, #tpu.memory_space<vmem>>, vector<2x32xf32>
      %c0_27 = arith.constant 0 : index
      %c0_28 = arith.constant 0 : index
      %99 = vector.load %arg12[%c0_27, %c0_28] : memref<2x32xf32, #tpu.memory_space<vmem>>, vector<2x32xf32>
      tpu.vector_store %arg12[%c0_27, %c0_28], %98 {strides = array<i32>} : memref<2x32xf32, #tpu.memory_space<vmem>>, vector<2x32xf32>,
    } else {
    }
    %c0 = arith.constant 0 : index
    %c0_1 = arith.constant 0 : index
    %c0_2 = arith.constant 0 : index
    %3 = vector.load %arg1[%c0, %c0_1, %c0_2] : memref<1x16x16xbf16, #tpu.memory_space<vmem>>, vector<1x16x16xbf16>
    %4 = vector.shape_cast %3 : vector<1x16x16xbf16> to vector<16x16xbf16>
    %c0_3 = arith.constant 0 : index
    %c0_4 = arith.constant 0 : index
    %5 = vector.load %arg4[%c0_3, %c0_4] : memref<16x32xbf16, #tpu.memory_space<vmem>>, vector<16x32xbf16>
    %cst = arith.constant dense<0.000000e+00> : vector<16x32xf32>
    %6 = tpu.matmul %4, %5, %cst {dimension_numbers = #tpu.dot_dimension_numbers<[1], [0], [0], [1], [0, 0, 1, 1], [], []>} : vector<16x16xbf16>, vector<16x32xbf16>, vector<16x32xf32> -> vector<16x32xf32>
    %c0_5 = arith.constant 0 : index
    %c0_6 = arith.constant 0 : index
    %7 = vector.load %arg6[%c0_5, %c0_6] : memref<1x32xf32, #tpu.memory_space<vmem>>, vector<1x32xf32>
    %8 = vector.broadcast %7 : vector<1x32xf32> to vector<16x32xf32>
    %9 = arith.addf %6, %8 : vector<16x32xf32>
    %c0_7 = arith.constant 0 : index
    %c0_8 = arith.constant 0 : index
    %c0_9 = arith.constant 0 : index
    %10 = vector.load %arg2[%c0_7, %c0_8, %c0_9] : memref<1x16x1xf32, #tpu.memory_space<vmem>>, vector<1x16x1xf32>
    %11 = vector.shape_cast %10 : vector<1x16x1xf32> to vector<16x1xf32>
    %c0_10 = arith.constant 0 : index
    %c0_11 = arith.constant 0 : index
    %12 = vector.load %arg5[%c0_10, %c0_11] : memref<32x32xbf16, #tpu.memory_space<vmem>>, vector<32x32xbf16>
    %c0_12 = arith.constant 0 : index
    %c0_13 = arith.constant 0 : index
    %13 = vector.load %arg12[%c0_12, %c0_13] : memref<2x32xf32, #tpu.memory_space<vmem>>, vector<2x32xf32>
    %14 = arith.truncf %13 : vector<2x32xf32> to vector<2x32xbf16>
    %cst_14 = arith.constant dense<0.000000e+00> : vector<2x32xf32>
    %15 = tpu.matmul %14, %12, %cst_14 {dimension_numbers = #tpu.dot_dimension_numbers<[1], [0], [0], [1], [0, 0, 1, 1], [], []>} : vector<2x32xbf16>, vector<32x32xbf16>, vector<2x32xf32> -> vector<2x32xf32>
    %16 = vector.extract_strided_slice %9 {offsets = [0, 0], sizes = [2, 32], strides = [1, 1]} : vector<16x32xf32> to vector<2x32xf32>
    %17 = arith.addf %15, %16 : vector<2x32xf32>
    %18 = math.tanh %17 : vector<2x32xf32>
    %19 = vector.extract_strided_slice %11 {offsets = [0, 0], sizes = [2, 1], strides = [1, 1]} : vector<16x1xf32> to vector<2x1xf32>
    %20 = arith.subf %18, %13 : vector<2x32xf32>
    %21 = vector.broadcast %19 : vector<2x1xf32> to vector<2x32xf32>
    %22 = arith.mulf %21, %20 : vector<2x32xf32>
    %23 = arith.addf %13, %22 : vector<2x32xf32>
    %24 = arith.truncf %23 : vector<2x32xf32> to vector<2x32xbf16>
    %cst_15 = arith.constant dense<0.000000e+00> : vector<2x32xf32>
    %25 = tpu.matmul %24, %12, %cst_15 {dimension_numbers = #tpu.dot_dimension_numbers<[1], [0], [0], [1], [0, 0, 1, 1], [], []>} : vector<2x32xbf16>, vector<32x32xbf16>, vector<2x32xf32> -> vector<2x32xf32>
    %26 = vector.extract_strided_slice %9 {offsets = [2, 0], sizes = [2, 32], strides = [1, 1]} : vector<16x32xf32> to vector<2x32xf32>
    %27 = arith.addf %25, %26 : vector<2x32xf32>
    %28 = math.tanh %27 : vector<2x32xf32>
    %29 = vector.extract_strided_slice %11 {offsets = [2, 0], sizes = [2, 1], strides = [1, 1]} : vector<16x1xf32> to vector<2x1xf32>
    %30 = arith.subf %28, %23 : vector<2x32xf32>
    %31 = vector.broadcast %29 : vector<2x1xf32> to vector<2x32xf32>
    %32 = arith.mulf %31, %30 : vector<2x32xf32>
    %33 = arith.addf %23, %32 : vector<2x32xf32>
    %34 = arith.truncf %33 : vector<2x32xf32> to vector<2x32xbf16>
    %cst_16 = arith.constant dense<0.000000e+00> : vector<2x32xf32>
    %35 = tpu.matmul %34, %12, %cst_16 {dimension_numbers = #tpu.dot_dimension_numbers<[1], [0], [0], [1], [0, 0, 1, 1], [], []>} : vector<2x32xbf16>, vector<32x32xbf16>, vector<2x32xf32> -> vector<2x32xf32>
    %36 = vector.extract_strided_slice %9 {offsets = [4, 0], sizes = [2, 32], strides = [1, 1]} : vector<16x32xf32> to vector<2x32xf32>
    %37 = arith.addf %35, %36 : vector<2x32xf32>
    %38 = math.tanh %37 : vector<2x32xf32>
    %39 = vector.extract_strided_slice %11 {offsets = [4, 0], sizes = [2, 1], strides = [1, 1]} : vector<16x1xf32> to vector<2x1xf32>
    %40 = arith.subf %38, %33 : vector<2x32xf32>
    %41 = vector.broadcast %39 : vector<2x1xf32> to vector<2x32xf32>
    %42 = arith.mulf %41, %40 : vector<2x32xf32>
    %43 = arith.addf %33, %42 : vector<2x32xf32>
    %44 = arith.truncf %43 : vector<2x32xf32> to vector<2x32xbf16>
    %cst_17 = arith.constant dense<0.000000e+00> : vector<2x32xf32>
    %45 = tpu.matmul %44, %12, %cst_17 {dimension_numbers = #tpu.dot_dimension_numbers<[1], [0], [0], [1], [0, 0, 1, 1], [], []>} : vector<2x32xbf16>, vector<32x32xbf16>, vector<2x32xf32> -> vector<2x32xf32>
    %46 = vector.extract_strided_slice %9 {offsets = [6, 0], sizes = [2, 32], strides = [1, 1]} : vector<16x32xf32> to vector<2x32xf32>
    %47 = arith.addf %45, %46 : vector<2x32xf32>
    %48 = math.tanh %47 : vector<2x32xf32>
    %49 = vector.extract_strided_slice %11 {offsets = [6, 0], sizes = [2, 1], strides = [1, 1]} : vector<16x1xf32> to vector<2x1xf32>
    %50 = arith.subf %48, %43 : vector<2x32xf32>
    %51 = vector.broadcast %49 : vector<2x1xf32> to vector<2x32xf32>
    %52 = arith.mulf %51, %50 : vector<2x32xf32>
    %53 = arith.addf %43, %52 : vector<2x32xf32>
    %54 = arith.truncf %53 : vector<2x32xf32> to vector<2x32xbf16>
    %cst_18 = arith.constant dense<0.000000e+00> : vector<2x32xf32>
    %55 = tpu.matmul %54, %12, %cst_18 {dimension_numbers = #tpu.dot_dimension_numbers<[1], [0], [0], [1], [0, 0, 1, 1], [], []>} : vector<2x32xbf16>, vector<32x32xbf16>, vector<2x32xf32> -> vector<2x32xf32>
    %56 = vector.extract_strided_slice %9 {offsets = [8, 0], sizes = [2, 32], strides = [1, 1]} : vector<16x32xf32> to vector<2x32xf32>
    %57 = arith.addf %55, %56 : vector<2x32xf32>
    %58 = math.tanh %57 : vector<2x32xf32>
    %59 = vector.extract_strided_slice %11 {offsets = [8, 0], sizes = [2, 1], strides = [1, 1]} : vector<16x1xf32> to vector<2x1xf32>
    %60 = arith.subf %58, %53 : vector<2x32xf32>
    %61 = vector.broadcast %59 : vector<2x1xf32> to vector<2x32xf32>
    %62 = arith.mulf %61, %60 : vector<2x32xf32>
    %63 = arith.addf %53, %62 : vector<2x32xf32>
    %64 = arith.truncf %63 : vector<2x32xf32> to vector<2x32xbf16>
    %cst_19 = arith.constant dense<0.000000e+00> : vector<2x32xf32>
    %65 = tpu.matmul %64, %12, %cst_19 {dimension_numbers = #tpu.dot_dimension_numbers<[1], [0], [0], [1], [0, 0, 1, 1], [], []>} : vector<2x32xbf16>, vector<32x32xbf16>, vector<2x32xf32> -> vector<2x32xf32>
    %66 = vector.extract_strided_slice %9 {offsets = [10, 0], sizes = [2, 32], strides = [1, 1]} : vector<16x32xf32> to vector<2x32xf32>
    %67 = arith.addf %65, %66 : vector<2x32xf32>
    %68 = math.tanh %67 : vector<2x32xf32>
    %69 = vector.extract_strided_slice %11 {offsets = [10, 0], sizes = [2, 1], strides = [1, 1]} : vector<16x1xf32> to vector<2x1xf32>
    %70 = arith.subf %68, %63 : vector<2x32xf32>
    %71 = vector.broadcast %69 : vector<2x1xf32> to vector<2x32xf32>
    %72 = arith.mulf %71, %70 : vector<2x32xf32>
    %73 = arith.addf %63, %72 : vector<2x32xf32>
    %74 = arith.truncf %73 : vector<2x32xf32> to vector<2x32xbf16>
    %cst_20 = arith.constant dense<0.000000e+00> : vector<2x32xf32>
    %75 = tpu.matmul %74, %12, %cst_20 {dimension_numbers = #tpu.dot_dimension_numbers<[1], [0], [0], [1], [0, 0, 1, 1], [], []>} : vector<2x32xbf16>, vector<32x32xbf16>, vector<2x32xf32> -> vector<2x32xf32>
    %76 = vector.extract_strided_slice %9 {offsets = [12, 0], sizes = [2, 32], strides = [1, 1]} : vector<16x32xf32> to vector<2x32xf32>
    %77 = arith.addf %75, %76 : vector<2x32xf32>
    %78 = math.tanh %77 : vector<2x32xf32>
    %79 = vector.extract_strided_slice %11 {offsets = [12, 0], sizes = [2, 1], strides = [1, 1]} : vector<16x1xf32> to vector<2x1xf32>
    %80 = arith.subf %78, %73 : vector<2x32xf32>
    %81 = vector.broadcast %79 : vector<2x1xf32> to vector<2x32xf32>
    %82 = arith.mulf %81, %80 : vector<2x32xf32>
    %83 = arith.addf %73, %82 : vector<2x32xf32>
    %84 = arith.truncf %83 : vector<2x32xf32> to vector<2x32xbf16>
    %cst_21 = arith.constant dense<0.000000e+00> : vector<2x32xf32>
    %85 = tpu.matmul %84, %12, %cst_21 {dimension_numbers = #tpu.dot_dimension_numbers<[1], [0], [0], [1], [0, 0, 1, 1], [], []>} : vector<2x32xbf16>, vector<32x32xbf16>, vector<2x32xf32> -> vector<2x32xf32>
    %86 = vector.extract_strided_slice %9 {offsets = [14, 0], sizes = [2, 32], strides = [1, 1]} : vector<16x32xf32> to vector<2x32xf32>
    %87 = arith.addf %85, %86 : vector<2x32xf32>
    %88 = math.tanh %87 : vector<2x32xf32>
    %89 = vector.extract_strided_slice %11 {offsets = [14, 0], sizes = [2, 1], strides = [1, 1]} : vector<16x1xf32> to vector<2x1xf32>
    %90 = arith.subf %88, %83 : vector<2x32xf32>
    %91 = vector.broadcast %89 : vector<2x1xf32> to vector<2x32xf32>
    %92 = arith.mulf %91, %90 : vector<2x32xf32>
    %93 = arith.addf %83, %92 : vector<2x32xf32>
    %c0_22 = arith.constant 0 : index
    %c0_23 = arith.constant 0 : index
    %94 = vector.load %arg12[%c0_22, %c0_23] : memref<2x32xf32, #tpu.memory_space<vmem>>, vector<2x32xf32>
    tpu.vector_store %arg12[%c0_22, %c0_23], %93 {strides = array<i32>} : memref<2x32xf32, #tpu.memory_space<vmem>>, vector<2x32xf32>,
    %c1_i32 = arith.constant 1 : i32
    %95 = arith.cmpi eq, %arg0, %c1_i32 : i32
    %96 = arith.extui %95 : i1 to i32
    %c0_i32_24 = arith.constant 0 : i32
    %97 = arith.cmpi ne, %96, %c0_i32_24 : i32
    scf.if %97 {
      %98 = arith.truncf %93 : vector<2x32xf32> to vector<2x32xbf16>
      %c0_25 = arith.constant 0 : index
      %c0_26 = arith.constant 0 : index
      %99 = vector.load %arg7[%c0_25, %c0_26] : memref<32x128xbf16, #tpu.memory_space<vmem>>, vector<32x128xbf16>
      %cst_27 = arith.constant dense<0.000000e+00> : vector<2x128xf32>
      %100 = tpu.matmul %98, %99, %cst_27 {dimension_numbers = #tpu.dot_dimension_numbers<[1], [0], [0], [1], [0, 0, 1, 1], [], []>} : vector<2x32xbf16>, vector<32x128xbf16>, vector<2x128xf32> -> vector<2x128xf32>
      %c0_28 = arith.constant 0 : index
      %c0_29 = arith.constant 0 : index
      %101 = vector.load %arg8[%c0_28, %c0_29] : memref<1x128xf32, #tpu.memory_space<vmem>>, vector<1x128xf32>
      %102 = vector.broadcast %101 : vector<1x128xf32> to vector<2x128xf32>
      %103 = arith.addf %100, %102 : vector<2x128xf32>
      %cst_30 = arith.constant 0.000000e+00 : f32
      %104 = vector.broadcast %cst_30 : f32 to vector<2x128xf32>
      %105 = arith.maximumf %103, %104 : vector<2x128xf32>
      %106 = arith.truncf %105 : vector<2x128xf32> to vector<2x128xbf16>
      %c0_31 = arith.constant 0 : index
      %c0_32 = arith.constant 0 : index
      %107 = vector.load %arg9[%c0_31, %c0_32] : memref<128x128xbf16, #tpu.memory_space<vmem>>, vector<128x128xbf16>
      %cst_33 = arith.constant dense<0.000000e+00> : vector<2x128xf32>
      %108 = tpu.matmul %106, %107, %cst_33 {dimension_numbers = #tpu.dot_dimension_numbers<[1], [0], [0], [1], [0, 0, 1, 1], [], []>} : vector<2x128xbf16>, vector<128x128xbf16>, vector<2x128xf32> -> vector<2x128xf32>
      %c0_34 = arith.constant 0 : index
      %c0_35 = arith.constant 0 : index
      %109 = vector.load %arg10[%c0_34, %c0_35] : memref<1x128xf32, #tpu.memory_space<vmem>>, vector<1x128xf32>
      %110 = vector.broadcast %109 : vector<1x128xf32> to vector<2x128xf32>
      %111 = arith.addf %108, %110 : vector<2x128xf32>
      %c0_36 = arith.constant 0 : index
      %c0_37 = arith.constant 0 : index
      %112 = vector.load %arg11[%c0_36, %c0_37] : memref<2x128xf32, #tpu.memory_space<vmem>>, vector<2x128xf32>
      tpu.vector_store %arg11[%c0_36, %c0_37], %111 {strides = array<i32>} : memref<2x128xf32, #tpu.memory_space<vmem>>, vector<2x128xf32>,
    } else {
    }
    return
  }
  func.func @transform_0(%arg0: i32) -> (i32, i32, i32) {
    %c0_i32 = arith.constant 0 : i32
    %c0_i32_0 = arith.constant 0 : i32
    %c0_i32_1 = arith.constant 0 : i32
    return %arg0, %c0_i32, %c0_i32_0 : i32, i32, i32
  }
  func.func @transform_1(%arg0: i32) -> (i32, i32, i32) {
    %c0_i32 = arith.constant 0 : i32
    %c0_i32_0 = arith.constant 0 : i32
    %c0_i32_1 = arith.constant 0 : i32
    return %arg0, %c0_i32, %c0_i32_0 : i32, i32, i32
  }
  func.func @transform_2(%arg0: i32) -> (i32, i32) {
    %c0_i32 = arith.constant 0 : i32
    %c0_i32_0 = arith.constant 0 : i32
    %c0_i32_1 = arith.constant 0 : i32
    return %c0_i32, %c0_i32_0 : i32, i32
  }
  func.func @transform_3(%arg0: i32) -> (i32, i32) {
    %c0_i32 = arith.constant 0 : i32
    %c0_i32_0 = arith.constant 0 : i32
    %c0_i32_1 = arith.constant 0 : i32
    return %c0_i32, %c0_i32_0 : i32, i32
  }
  func.func @transform_4(%arg0: i32) -> (i32, i32) {
    %c0_i32 = arith.constant 0 : i32
    %c0_i32_0 = arith.constant 0 : i32
    %c0_i32_1 = arith.constant 0 : i32
    return %c0_i32, %c0_i32_0 : i32, i32
  }
  func.func @transform_5(%arg0: i32) -> (i32, i32) {
    %c0_i32 = arith.constant 0 : i32
    %c0_i32_0 = arith.constant 0 : i32
    %c0_i32_1 = arith.constant 0 : i32
    return %c0_i32, %c0_i32_0 : i32, i32
  }
  func.func @transform_6(%arg0: i32) -> (i32, i32) {
    %c0_i32 = arith.constant 0 : i32
    %c0_i32_0 = arith.constant 0 : i32
    %c0_i32_1 = arith.constant 0 : i32
    return %c0_i32, %c0_i32_0 : i32, i32
  }
  func.func @transform_7(%arg0: i32) -> (i32, i32) {
    %c0_i32 = arith.constant 0 : i32
    %c0_i32_0 = arith.constant 0 : i32
    %c0_i32_1 = arith.constant 0 : i32
    return %c0_i32, %c0_i32_0 : i32, i32
  }
  func.func @transform_8(%arg0: i32) -> (i32, i32) {
    %c0_i32 = arith.constant 0 : i32
    %c0_i32_0 = arith.constant 0 : i32
    %c0_i32_1 = arith.constant 0 : i32
    return %c0_i32, %c0_i32_0 : i32, i32
  }
  func.func @transform_9(%arg0: i32) -> (i32, i32) {
    %c0_i32 = arith.constant 0 : i32
    %c0_i32_0 = arith.constant 0 : i32
    %c0_i32_1 = arith.constant 0 : i32
    return %c0_i32, %c0_i32_0 : i32, i32
  }
  func.func @transform_10(%arg0: i32) -> (i32, i32) {
    %c0_i32 = arith.constant 0 : i32
    %c0_i32_0 = arith.constant 0 : i32
    %c0_i32_1 = arith.constant 0 : i32
    return %c0_i32, %c0_i32_0 : i32, i32
  }
}

</mosaic_0001>

<bundles_post_ra>
// kernel: tpu_custom_call.1
= control target key start
LH: loop header
LB: loop body
LE: loop exit
PB: predicated region body
PF: predicated region fallthrough
CT: control target
= control target key end

     0   :  { %s2414_s0 = inlined_call_operand.hbm [shape: bf16[2,16,16], index: 0, kind: input, shape index: {}]   ;;  %s2415_s1 = inlined_call_operand.vmem [shape: f32[2,16,1], index: 1, kind: input, shape index: {}]   ;;  %s2416_s2 = inlined_call_operand.hbm [shape: f32[2,32], index: 2, kind: input, shape index: {}]   ;;  %s2417_s3 = inlined_call_operand.hbm [shape: bf16[16,32], index: 3, kind: input, shape index: {}]   ;;  %s2418_s4 = inlined_call_operand.hbm [shape: bf16[32,32], index: 4, kind: input, shape index: {}]   ;;  %s2419_s5 = inlined_call_operand.hbm [shape: f32[1,32], index: 5, kind: input, shape index: {}]   ;;  %s2420_s6 = inlined_call_operand.hbm [shape: bf16[32,128], index: 6, kind: input, shape index: {}]   ;;  %s2421_s7 = inlined_call_operand.hbm [shape: f32[1,128], index: 7, kind: input, shape index: {}]   ;;  %s2422_s8 = inlined_call_operand.vmem [shape: bf16[128,128], index: 8, kind: input, shape index: {}]   ;;  %s2423_s9 = inlined_call_operand.vmem [shape: f32[1,128], index: 9, kind: input, shape index: {}]   ;;  %s2424_s10 = inlined_call_operand.hbm [shape: f32[2,128], index: 10, kind: output, shape index: {}]  }
   0x1   :  { %2428 = sst [smem:[#allocation21_spill]] %s2416_s2 }
   0x2   :  { %2429 = sst [smem:[#allocation22_spill]] %s2418_s4 }
   0x3   :  { %2430 = sst [smem:[#allocation23_spill]] %s2424_s10 }
   0x4   :  { %15 = vsyncpa [#allocation4], 0 }
   0x5   :  { %17 = vsyncpa [#allocation4 + $0x1], 0 }
   0x6   :  { %18 = vsyncpa [#allocation7], 0 }
   0x7   :  { %19 = vsyncpa [#allocation10], 0 }
   0x8   :  { %20 = vsyncpa [#allocation13], 0 }
   0x9   :  { %21 = vsyncpa [#allocation5], 0  ;;  %s2003_s13 = smov 0   ;;  %s2005_s14 = smov 0  }
   0xa   :  { %s2007_s15 = smov 0   ;;  %s2009_s16 = smov 0  }
   0xb LB: > { %s1933_s17 = smov [#allocation6]   ;;  %s2024_s19 = sadd.s32 4294967295, %s1931_s16   ;;  %s1931_s16 = sphi %s2009_s16, %s2451_s16   ;;  %s1927_s15 = sphi %s2007_s15, %s2450_s15   ;;  %s1923_s14 = sphi %s2005_s14, %s2449_s14   ;;  %s1919_s13 = sphi %s2003_s13, %s2448_s13  }
   0xc   : > { %s286_s18 = sshll.u32 %s1933_s17, 4  ;;  %p1320_p0 = scmp.ge.s32.totalorder %s1931_s16, 1  ;;  %s287_s18 = int_to_ptr.vmem [resolvable:$true] %s286_s18 }
   0xd   : > { %p2425_p1 = scmp.eq.s32.totalorder %s2024_s19, 0  ;;  %p273_p2 = scmp.lt.s32.totalorder %s1931_s16, 3 }
   0xe   : > { %s1934_s21 = smov [#allocation9]   ;;  %s1935_s24 = smov [#allocation12]  }
   0xf   : > { %p2030_p4 = pnand %p1320_p0, %p273_p2  ;;  %s309_s22 = sshll.u32 %s1934_s21, 4  ;;  %s2042_s22 = int_to_ptr.vmem [resolvable:$true] %s309_s22 }
  0x10   : > { %s333_s25 = sshll.u32 %s1935_s24, 4  ;;  %s2433_s2 = sld [smem:[#allocation21_spill]]  ;;  %s2044_s25 = int_to_ptr.vmem [resolvable:$true] %s333_s25 }
  0x11   : > { %s2431_s20 = scalar_select %p2030_p4, 1, 0 }
  0x12   : > { %p1542_p5 = pneg %p2030_p4 }
  0x14   : > { %p2038_p6 = pnand %p1542_p5, %p2425_p1 }
  0x16   : > { %s1657_s28 = scalar_lea.hbm %s2433_s2, 32  ;;  %p2054_p8 = pneg %p2038_p6 }
  0x17   : > { %p1658_p7 = scmp.ne.s32.totalorder %s2433_s2, %s1657_s28  ;;  %p1664_p11 = scmp.lt.u32.totalorder %s1657_s28, %s2433_s2 }
  0x19   : > { %p1660_p9 = pnand %p2054_p8, %p1658_p7 }
  0x1b   : > { %p1661_p10 = pneg %p1660_p9 }
  0x1d   : > { %p1666_p12 = pnand %p1664_p11, %p1661_p10 }
  0x1f   : > { %1669 = shalt.err (!%p1666_p12)
}
  0x20   : > { %s1670_s21 = scalar_lea.vmem %s287_s18, 32  ;;  %p1678_p5 = scmp.lt.s32.totalorder %s287_s18, %s287_s18 }
  0x21   : > { %p1671_p13 = scmp.ne.s32.totalorder %s287_s18, %s1670_s21  ;;  %p1679_p3 = scmp.lt.s32.totalorder %s1670_s21, %s1670_s21 }
  0x23   : > { %p1673_p0 = pnand %p1671_p13, %p2054_p8  ;;  %p1680_p1 = por %p1679_p3, %p1678_p5 }
  0x25   : > { %p1674_p2 = pneg %p1673_p0 }
  0x27   : > { %p1681_p4 = pnand %p1680_p1, %p1674_p2 }
  0x29   : > { %1684 = shalt.err (!%p1681_p4)
}
  0x2a   : > { %1545 = dma.hbm_to_vmem [thread:$0]  (!%p2038_p6), %s2433_s2, 32, %s287_s18, [#allocation7]  }
  0x2b   : > { %s2435_s4 = sld [smem:[#allocation22_spill]] }
  0x31   : > { %s1685_s29 = scalar_lea.hbm %s2435_s4, 256 }
  0x32   : > { %p1686_p7 = scmp.ne.s32.totalorder %s2435_s4, %s1685_s29  ;;  %p1692_p1 = scmp.lt.u32.totalorder %s1685_s29, %s2435_s4 }
  0x34   : > { %p1688_p9 = pnand %p1686_p7, %p2054_p8 }
  0x36   : > { %p1689_p3 = pneg %p1688_p9 }
  0x38   : > { %p1694_p4 = pnand %p1692_p1, %p1689_p3 }
  0x3a   : > { %1697 = shalt.err (!%p1694_p4)
}
  0x3b   : > { %s1698_s18 = scalar_lea.vmem %s2042_s22, 256  ;;  %p1706_p13 = scmp.lt.s32.totalorder %s2042_s22, %s2042_s22 }
  0x3c   : > { %p1699_p10 = scmp.ne.s32.totalorder %s2042_s22, %s1698_s18  ;;  %p1707_p0 = scmp.lt.s32.totalorder %s1698_s18, %s1698_s18 }
  0x3e   : > { %p1701_p11 = pnand %p1699_p10, %p2054_p8  ;;  %p1708_p2 = por %p1707_p0, %p1706_p13 }
  0x40   : > { %p1702_p12 = pneg %p1701_p11 }
  0x42   : > { %p1709_p5 = pnand %p1708_p2, %p1702_p12 }
  0x44   : > { %1712 = shalt.err (!%p1709_p5)
}
  0x45   : > { %s1936_s24 = smov 64   ;;  %s1937_s26 = smov 4  }
  0x46   : > { %1551 = dma.hbm_to_vmem [thread:$0]  (!%p2038_p6), %s2435_s4, 256, %s2042_s22, [#allocation10], %s1936_s24, %s1936_s24, %s1937_s26  }
  0x47   : > { %s1713_s12 = scalar_lea.hbm %s2420_s6, 256 }
  0x48   : > { %p1714_p7 = scmp.ne.s32.totalorder %s2420_s6, %s1713_s12  ;;  %p1720_p1 = scmp.lt.u32.totalorder %s1713_s12, %s2420_s6 }
  0x4a   : > { %p1716_p9 = pnand %p1714_p7, %p2054_p8 }
  0x4c   : > { %p1717_p3 = pneg %p1716_p9 }
  0x4e   : > { %p1722_p4 = pnand %p1720_p1, %p1717_p3 }
  0x50   : > { %1725 = shalt.err (!%p1722_p4)
}
  0x51   : > { %s1726_s22 = scalar_lea.vmem %s2044_s25, 256  ;;  %p1734_p13 = scmp.lt.s32.totalorder %s2044_s25, %s2044_s25 }
  0x52   : > { %p1727_p10 = scmp.ne.s32.totalorder %s2044_s25, %s1726_s22  ;;  %p1735_p0 = scmp.lt.s32.totalorder %s1726_s22, %s1726_s22 }
  0x54   : > { %p1729_p11 = pnand %p1727_p10, %p2054_p8  ;;  %p1736_p2 = por %p1735_p0, %p1734_p13 }
  0x56   : > { %p1730_p12 = pneg %p1729_p11 }
  0x58   : > { %p1737_p5 = pnand %p1736_p2, %p1730_p12 }
  0x5a   : > { %1740 = shalt.err (!%p1737_p5)
}
  0x5b   : > { %1557 = dma.hbm_to_vmem [thread:$0]  (!%p2038_p6), %s2420_s6, 256, %s2044_s25, [#allocation13], %s1936_s24, %s1936_s24, %s1937_s26  }
  0x5c   : > { %s1938_s28 = smov [#allocation8]   ;;  %s1939_s30 = smov [#allocation11]  }
  0x5d   : > { %s296_s29 = sshll.u32 %s1938_s28, 4  ;;  %s323_s12 = sshll.u32 %s1939_s30, 4  ;;  %s297_s29 = int_to_ptr.vmem [resolvable:$true] %s296_s29  ;;  %s324_s12 = int_to_ptr.vmem [resolvable:$true] %s323_s12 }
  0x5e   : > { %s1741_s18 = scalar_lea.hbm %s2417_s3, 128 }
  0x5f   : > { %p1742_p7 = scmp.ne.s32.totalorder %s2417_s3, %s1741_s18  ;;  %p1748_p1 = scmp.lt.u32.totalorder %s1741_s18, %s2417_s3 }
  0x61   : > { %p1744_p9 = pnand %p1742_p7, %p2054_p8 }
  0x63   : > { %p1745_p3 = pneg %p1744_p9 }
  0x65   : > { %p1750_p4 = pnand %p1748_p1, %p1745_p3 }
  0x67   : > { %1753 = shalt.err (!%p1750_p4)
}
  0x68   : > { %s1754_s25 = scalar_lea.vmem %s297_s29, 128  ;;  %p1762_p13 = scmp.lt.s32.totalorder %s297_s29, %s297_s29 }
  0x69   : > { %p1755_p10 = scmp.ne.s32.totalorder %s297_s29, %s1754_s25  ;;  %p1763_p0 = scmp.lt.s32.totalorder %s1754_s25, %s1754_s25 }
  0x6b   : > { %p1757_p11 = pnand %p1755_p10, %p2054_p8  ;;  %p1764_p2 = por %p1763_p0, %p1762_p13 }
  0x6d   : > { %p1758_p12 = pneg %p1757_p11 }
  0x6f   : > { %p1765_p5 = pnand %p1764_p2, %p1758_p12 }
  0x71   : > { %1768 = shalt.err (!%p1765_p5)
}
  0x72   : > { %1548 = dma.hbm_to_vmem [thread:$0]  (!%p2038_p6), %s2417_s3, 128, %s297_s29, [#allocation7], %s1936_s24, %s1936_s24, %s1937_s26  }
  0x73   : > { %s1769_s30 = scalar_lea.hbm %s2419_s5, 16 }
  0x74   : > { %p1770_p7 = scmp.ne.s32.totalorder %s2419_s5, %s1769_s30  ;;  %p1776_p1 = scmp.lt.u32.totalorder %s1769_s30, %s2419_s5 }
  0x76   : > { %p1772_p9 = pnand %p1770_p7, %p2054_p8 }
  0x78   : > { %p1773_p3 = pneg %p1772_p9 }
  0x7a   : > { %p1778_p4 = pnand %p1776_p1, %p1773_p3 }
  0x7c   : > { %1781 = shalt.err (!%p1778_p4)
}
  0x7d   : > { %s1782_s2 = scalar_lea.vmem %s324_s12, 16  ;;  %s1789_s29 = scalar_lea.vmem %s324_s12, 32 }
  0x7e   : > { %p1783_p10 = scmp.ne.s32.totalorder %s324_s12, %s1782_s2  ;;  %p1790_p13 = scmp.lt.s32.totalorder %s324_s12, %s324_s12 }
  0x7f   : > { %p1791_p0 = scmp.lt.s32.totalorder %s1789_s29, %s1782_s2 }
  0x80   : > { %p1785_p11 = pnand %p1783_p10, %p2054_p8 }
  0x81   : > { %p1792_p2 = por %p1791_p0, %p1790_p13 }
  0x82   : > { %p1786_p12 = pneg %p1785_p11 }
  0x84   : > { %p1793_p5 = pnand %p1792_p2, %p1786_p12 }
  0x86   : > { %1796 = shalt.err (!%p1793_p5)
}
  0x87   : > { %1554 = dma.hbm_to_vmem [thread:$0]  (!%p2038_p6), %s2419_s5, 16, %s324_s12, [#allocation10]  }
  0x88   : > { %s1940_s10 = smov [#allocation14]   ;;  %s1797_s17 = scalar_lea.hbm %s2421_s7, 16 }
  0x89   : > { %s347_s27 = sshll.u32 %s1940_s10, 4  ;;  %p1798_p7 = scmp.ne.s32.totalorder %s2421_s7, %s1797_s17  ;;  %s348_s27 = int_to_ptr.vmem [resolvable:$true] %s347_s27 }
  0x8a   : > { %p1804_p1 = scmp.lt.u32.totalorder %s1797_s17, %s2421_s7 }
  0x8b   : > { %p1800_p9 = pnand %p1798_p7, %p2054_p8 }
  0x8d   : > { %p1801_p3 = pneg %p1800_p9 }
  0x8f   : > { %p1806_p4 = pnand %p1804_p1, %p1801_p3 }
  0x91   : > { %1809 = shalt.err (!%p1806_p4)
}
  0x92   : > { %s1810_s12 = scalar_lea.vmem %s348_s27, 16  ;;  %s1817_s29 = scalar_lea.vmem %s348_s27, 32 }
  0x93   : > { %p1811_p10 = scmp.ne.s32.totalorder %s348_s27, %s1810_s12  ;;  %p1818_p13 = scmp.lt.s32.totalorder %s348_s27, %s348_s27 }
  0x94   : > { %p1819_p0 = scmp.lt.s32.totalorder %s1817_s29, %s1810_s12 }
  0x95   : > { %p1813_p11 = pnand %p1811_p10, %p2054_p8 }
  0x96   : > { %p1820_p2 = por %p1819_p0, %p1818_p13 }
  0x97   : > { %p1814_p12 = pneg %p1813_p11 }
  0x99   : > { %p1821_p5 = pnand %p1820_p2, %p1814_p12 }
  0x9b   : > { %1824 = shalt.err (!%p1821_p5)
}
  0x9c   : > { %1560 = dma.hbm_to_vmem [thread:$0]  (!%p2038_p6), %s2421_s7, 16, %s348_s27, [#allocation13]  }
  0x9d   : > { %s2180_s11 = sadd.s32 1, %s1931_s16   ;;  %s34_s23 = sadd.s32 1, %s1927_s15 }
  0x9e   : > { %s31_s10 = ssub.s32 %s1931_s16, %s2180_s11  ;;  %p41_p8 = scmp.ne.s32.totalorder %s1927_s15, %s1923_s14 }
  0x9f   : > { %p32_p7 = scmp.eq.s32.totalorder %s31_s10, 0  ;;  %p42_p9 = scmp.eq.s32.totalorder %s1931_s16, 0 }
  0xa0   : > { %p47_p3 = scmp.ne.s32.totalorder %s1923_s14, %s1919_s13  ;;  %p1571_p1 = scmp.lt.s32.totalorder %s1931_s16, 2 }
  0xa1   : > { %s2192_s28 = scalar_select %p32_p7, %s1927_s15, %s34_s23  }
  0xa2   : > { %p43_p4 = por %p42_p9, %p41_p8  ;;  %p2436_p10 = scmp.eq.s32.totalorder %s2024_s19, 0 }
  0xa3   : > { %s364_s17 = sand.u32 1, %s1927_s15   ;;  %s1374_s27 = sshll.u32 %s1931_s16, 7 }
  0xa4   : > { %p2196_p11 = por %p2436_p10, %p47_p3  ;;  %s1328_s21 = sshll.u32 %s364_s17, 3 }
  0xa5   : > { %s2205_s2 = scalar_lea.hbm %s2414_s0, %s1374_s27  ;;  %s368_s13 = scalar_lea.vmem [#allocation3], %s1328_s21 }
  0xa6   : > { %s375_s12 = sshll.u32 %s368_s13, 4  ;;  %p2207_p6 = pnand %p1571_p1, %p43_p4  ;;  %s2211_s12 = int_to_ptr.vmem [resolvable:$true] %s375_s12 }
  0xa7   : > { %s2213_s16 = scalar_lea.sflag [#allocation4], %s364_s17  ;;  %s1825_s25 = scalar_lea.hbm %s2205_s2, 128 }
  0xa8   : > { %p1826_p12 = scmp.ne.s32.totalorder %s2205_s2, %s1825_s25  ;;  %p1827_p13 = pneg %p2207_p6 }
  0xa9   : > { %s1830_s10 = scalar_lea.hbm %s2414_s0, 256  ;;  %p1831_p5 = scmp.lt.u32.totalorder %s2205_s2, %s2414_s0 }
  0xaa   : > { %p1828_p0 = pnand %p1827_p13, %p1826_p12  ;;  %p1832_p8 = scmp.lt.u32.totalorder %s1830_s10, %s1825_s25 }
  0xab   : > { %p1834_p9 = scmp.lt.u32.totalorder %s1825_s25, %s2205_s2 }
  0xac   : > { %p1829_p2 = pneg %p1828_p0  ;;  %p1833_p7 = por %p1832_p8, %p1831_p5 }
  0xae   : > { %p1835_p3 = por %p1834_p9, %p1833_p7 }
  0xb0   : > { %p1836_p1 = pnand %p1835_p3, %p1829_p2 }
  0xb2   : > { %1839 = shalt.err (!%p1836_p1)
}
  0xb3   : > { %s1840_s17 = scalar_lea.vmem %s2211_s12, 128  ;;  %s1941_s18 = smov [#allocation3]  }
  0xb4   : > { %p1841_p4 = scmp.ne.s32.totalorder %s2211_s12, %s1840_s17  ;;  %s1845_s22 = sshll.u32 %s1941_s18, 4  ;;  %s1846_s22 = int_to_ptr.vmem [resolvable:$false] %s1845_s22 }
  0xb5   : > { %s1847_s13 = scalar_lea.vmem %s1846_s22, 256  ;;  %p1848_p0 = scmp.lt.s32.totalorder %s2211_s12, %s1846_s22 }
  0xb6   : > { %p1843_p10 = pnand %p1841_p4, %p1827_p13  ;;  %p1849_p5 = scmp.lt.s32.totalorder %s1847_s13, %s1840_s17 }
  0xb8   : > { %p1844_p12 = pneg %p1843_p10  ;;  %p1850_p8 = por %p1849_p5, %p1848_p0 }
  0xba   : > { %p1851_p7 = pnand %p1850_p8, %p1844_p12 }
  0xbc   : > { %1854 = shalt.err (!%p1851_p7)
}
  0xbd   : > { %1564 = dma.hbm_to_vmem [thread:$0]  (!%p2207_p6), %s2205_s2, 128, %s2211_s12, %s2213_s16, %s1936_s24, %s1936_s24, %s1937_s26  }
  0xbe   : > { %p2439_p13 = scmp.ne.s32.totalorder %s2431_s20, 0 }
  0xbf   : > { %s397_s25 = sand.u32 (!%p2439_p13), 1, %s1923_s14  }
  0xc0   : > { %395 = sbr.rel (%p2439_p13) target bundleno = 2581 (0xa15), region = 60  ;;  %s1332_s4 = sshll.u32 (!%p2439_p13), %s397_s25, 3 }
  0xc1   : > { %s398_s23 = scalar_lea.sflag (!%p2439_p13), [#allocation4], %s397_s25  ;;  %s401_s10 = scalar_lea.vmem (!%p2439_p13), [#allocation3], %s1332_s4 }
  0xc7   : > { %1898 = dma.done.wait (%p2196_p11), %s398_s23, 128  }
  0xc8   : > { %1900 = vsyncadd (%p2196_p11), %s398_s23, 4294967168  ;;  %p2440_p2 = scmp.eq.s32.totalorder %s2024_s19, 0 }
  0xca   : > { %1902 = dma.done.wait (%p2440_p2), [#allocation7], 160   ;;  %p2441_p9 = pmov %p2440_p2 }
  0xcb   : > { %p2442_p6 = pmov %p2440_p2 }
  0xcc   : > { %1904 = vsyncadd (%p2441_p9), [#allocation7], 4294967136 }
  0xcd   : > { %1906 = dma.done.wait (%p2442_p6), [#allocation10], 272   ;;  %p2443_p3 = pmov %p2440_p2 }
  0xce   : > { %p2444_p1 = pmov %p2440_p2 }
  0xcf   : > { %1908 = vsyncadd (%p2443_p3), [#allocation10], 4294967024 }
  0xd0   : > { %1910 = dma.done.wait (%p2444_p1), [#allocation13], 272   ;;  %p2445_p4 = pmov %p2444_p1 }
  0xd1   : > { %p462_p11 = scmp.lt.s32.totalorder %s2024_s19, 1  ;;  %p2446_p10 = scmp.ne.s32.totalorder %s2024_s19, 0 }
  0xd2   : > { %1912 = vsyncadd (%p2445_p4), [#allocation13], 4294967024  ;;  %v472_v0 = vld [vmem:[#allocation6] sm:$0x3] (!%p2446_p10)  ;;  %vm473_vm0 = vcmask (!%p2446_p10), 254976  }
  0xd3   : > { %s463_s20 = scalar_select %p462_p11, %s2024_s19, 1 }
  0xd4   : > { %471 = sbr.rel (%p2446_p10) target bundleno = 219 (0xdb), region = 92  ;;  %474 = vst.msk [vmem:[#allocation2] sm:$0x3] (!%p2446_p10), %vm473_vm0, %v472_v0 }
  0xd5   : > { %s1375_s24 = sshll.u32 %s463_s20, 4 }
  0xd6   : > { %s2268_s2 = scalar_lea.vmem %s2415_s1, %s1375_s24 }
  0xdb PF: > { %v1627_v1 = vld [vmem:[#allocation8] sm:$0xff]   ;;  %v1942_v2 = vmov 0.0   ;;  %v2274_v3 = vld [vmem:[#allocation9] sm:$0xff]   ;;  %vm1943_vm1 = vmmov 0   ;;  %vm497_vm2 = vcmask 130048   ;;  %v2279_v5 = vld [vmem:[#allocation9 + $0x8] sm:$0xff]  }
  0xdc   : > { %1414 = vmatprep.subr.bf16.mxu0 %v1942_v2  ;;  %1420 = vmatprep.subr.bf16.mxu1 %v1942_v2  ;;  %v1629_v4 = vld [vmem:[%s401_s10] sm:$0xff]   ;;  %v548_v6 = vld [vmem:[#allocation2] sm:$0x3]  ;;  %v1944_v8 = vmov 0   ;;  %vm562_vm3 = vcmask 261120   ;;  %vm1006_vm4 = vcmask 254976  }
  0xdd   : > { %1415 = vmatpush3.bf16.msra.mxu0 %v1627_v1  ;;  %1416 = vmatprep.mubr.msk.bf16.mxu0 %vm1943_vm1, %v1942_v2  ;;  %v542_v7 = vld [vmem:[%s2268_s2] sm:$0xff]  ;;  %v549_v9 = vpack.c.bf16 %v548_v6, %v548_v6  ;;  %v543_v10 = vld [vmem:[%s2268_s2 + $0x8] sm:$0xff]  ;;  %p1356_p12 = scmp.ne.s32.totalorder %s2024_s19, 1 }
  0xde   : > { %1421 = vmatpush3.bf16.msra.mxu1 %v2274_v3  ;;  %1424 = vmatprep.mubr.msk.bf16.mxu1 %vm1943_vm1, %v1942_v2  ;;  %v1342_v11 = vld [vmem:[#allocation11] ss:$0 sm:$0xff]  ;;  %vm1946_vm5 = vmmov (!%p1356_p12), 0  }
  0xdf   : > { %1422 = vmatprep.subr.bf16.mxu1 %v1942_v2  ;;  %1428 = vmatprep.subr.bf16.mxu0 %v1942_v2 }
  0xe0   : > { %1417 = vmatmul.mubr.msk.bf16.vlgmr.msra.gmra.mrb[0].mxu0 %vm497_vm2, %v1629_v4  ;;  %1626 = vset.pattern.permute.xlu0 %v1944_v8 }
  0xe1   : > { %610 = vperm.xlu0 %1626, %v542_v7   ;;  %1429 = vmatpush3.bf16.msra.mxu0 %v2274_v3 }
  0xe2   : > { %1423 = vmatpush3.bf16.msra.mxu1 %v2279_v5  ;;  %1430 = vmatprep.subr.bf16.mxu0 %v1942_v2 }
  0xe3   : > { %1432 = vmatprep.mubr.msk.bf16.mxu0 %vm1943_vm1, %v1942_v2  ;;  %1436 = vmatprep.subr.bf16.mxu1 %v1942_v2 }
  0xe5   : > { %1425 = vmatmul.mubr.msk.bf16.vlgmr.msra.gmra.mrb[0].mxu1 %vm562_vm3, %v549_v9  ;;  %832 = vperm.xlu0 %1626, %v543_v10  }
  0xe6   : > { %1431 = vmatpush3.bf16.msra.mxu0 %v2279_v5  ;;  %1437 = vmatpush3.bf16.msra.mxu1 %v2274_v3 }
  0xe7   : > { %1438 = vmatprep.subr.bf16.mxu1 %v1942_v2  ;;  %1440 = vmatprep.mubr.msk.bf16.mxu1 %vm1943_vm1, %v1942_v2 }
  0xe8   : > { %1444 = vmatprep.subr.bf16.mxu0 %v1942_v2 }
  0xea   : > { %1439 = vmatpush3.bf16.msra.mxu1 %v2279_v5 }
  0xeb   : > { %1452 = vmatprep.subr.bf16.mxu1 %v1942_v2 }
 0x160   : > { %v611_v25 = vpop.permute.xlu0 %610 }
 0x1b3   : > { %v535_v12 = vpop.f32.mrb[0].mxu0 }
 0x1b4   : > { %v1418_v13 = vpop.f32.mrb[1].mxu0  ;;  %v2302_v14 = vadd.f32 %v1342_v11, %v535_v12 }
 0x1b5   : > { %v538_v15 = vpop.f32.mrb[2].mxu0 }
 0x1b6   : > { %v2304_v16 = vadd.f32 %v1342_v11, %v538_v15  ;;  %v1419_v17 = vpop.f32.mrb[3].mxu0  ;;  %v617_v29 = vrot.slane %v2302_v14, 2  ;;  %v673_v42 = vrot.slane %v2302_v14, 4  ;;  %v729_v55 = vrot.slane %v2302_v14, 6 }
 0x1b8   : > { %v600_v18 = vpop.f32.mrb[0].mxu1 }
 0x1b9   : > { %v601_v19 = vadd.f32 %v600_v18, %v2302_v14  ;;  %v1426_v20 = vpop.f32.mrb[1].mxu1  ;;  %v833_v14 = vpop.permute.xlu0 %832 }
 0x1ba   : > { %v603_v21 = vpop.f32.mrb[2].mxu1 }
 0x1bb   : > { %1631 = vtanh.f32 %v601_v19  ;;  %v1427_v22 = vpop.f32.mrb[3].mxu1  ;;  %v839_v19 = vrot.slane %v2304_v16, 2 }
 0x1c5   : > { %v1632_v23 = vpop.eup %1631 }
 0x1c6   : > { %v607_v24 = vsub.f32 %v1632_v23, %v548_v6 }
 0x1c8   : > { %v613_v26 = vmul.f32 %v611_v25, %v607_v24 }
 0x1ca   : > { %v614_v27 = vadd.f32 %v613_v26, %v548_v6 }
 0x1cc   : > { %v615_v28 = vpack.c.bf16 %v614_v27, %v614_v27 }
 0x1ce   : > { %1433 = vmatmul.mubr.msk.bf16.vlgmr.msra.gmra.mrb[4].mxu0 %vm562_vm3, %v615_v28 }
 0x1cf   : > { %1445 = vmatpush3.bf16.msra.mxu0 %v2274_v3  ;;  %1448 = vmatprep.mubr.msk.bf16.mxu0 %vm1943_vm1, %v1942_v2 }
 0x1d0   : > { %1446 = vmatprep.subr.bf16.mxu0 %v1942_v2 }
 0x1d3   : > { %1447 = vmatpush3.bf16.msra.mxu0 %v2279_v5 }
 0x1d4   : > { %1460 = vmatprep.subr.bf16.mxu0 %v1942_v2 }
 0x2a1   : > { %v656_v30 = vpop.f32.mrb[4].mxu0 }
 0x2a2   : > { %v657_v31 = vadd.f32 %v656_v30, %v617_v29  ;;  %v1434_v32 = vpop.f32.mrb[5].mxu0 }
 0x2a3   : > { %v659_v33 = vpop.f32.mrb[6].mxu0 }
 0x2a4   : > { %1633 = vtanh.f32 %v657_v31  ;;  %v1435_v34 = vpop.f32.mrb[7].mxu0 }
 0x2ae   : > { %v1634_v35 = vpop.eup %1633 }
 0x2af   : > { %v663_v36 = vsub.f32 %v1634_v35, %v614_v27 }
 0x2b1   : > { %v665_v37 = vrot.slane %v663_v36, 6 }
 0x2b3   : > { %v667_v38 = vmul.f32 %v665_v37, %v611_v25 }
 0x2b5   : > { %v669_v39 = vrot.slane %v667_v38, 2 }
 0x2b7   : > { %v671_v40 = vadd.f32 %v669_v39, %v614_v27 }
 0x2b9   : > { %v672_v41 = vpack.c.bf16 %v671_v40, %v671_v40 }
 0x2bb   : > { %1441 = vmatmul.mubr.msk.bf16.vlgmr.msra.gmra.mrb[4].mxu1 %vm562_vm3, %v672_v41 }
 0x2bc   : > { %1453 = vmatpush3.bf16.msra.mxu1 %v2274_v3  ;;  %1456 = vmatprep.mubr.msk.bf16.mxu1 %vm1943_vm1, %v1942_v2 }
 0x2bd   : > { %1454 = vmatprep.subr.bf16.mxu1 %v1942_v2 }
 0x2c0   : > { %1455 = vmatpush3.bf16.msra.mxu1 %v2279_v5 }
 0x2c1   : > { %1468 = vmatprep.subr.bf16.mxu1 %v1942_v2 }
 0x38e   : > { %v712_v43 = vpop.f32.mrb[4].mxu1 }
 0x38f   : > { %v713_v44 = vadd.f32 %v712_v43, %v673_v42  ;;  %v1442_v45 = vpop.f32.mrb[5].mxu1  ;;  %v951_v42 = vrot.slane %v2304_v16, 6 }
 0x390   : > { %v715_v46 = vpop.f32.mrb[6].mxu1 }
 0x391   : > { %1635 = vtanh.f32 %v713_v44  ;;  %v1443_v47 = vpop.f32.mrb[7].mxu1 }
 0x39b   : > { %v1636_v48 = vpop.eup %1635 }
 0x39c   : > { %v719_v49 = vsub.f32 %v1636_v48, %v671_v40 }
 0x39e   : > { %v721_v50 = vrot.slane %v719_v49, 4 }
 0x3a0   : > { %v723_v51 = vmul.f32 %v721_v50, %v611_v25 }
 0x3a2   : > { %v725_v52 = vrot.slane %v723_v51, 4 }
 0x3a4   : > { %v727_v53 = vadd.f32 %v725_v52, %v671_v40 }
 0x3a6   : > { %v728_v54 = vpack.c.bf16 %v727_v53, %v727_v53 }
 0x3a8   : > { %1449 = vmatmul.mubr.msk.bf16.vlgmr.msra.gmra.mrb[8].mxu0 %vm562_vm3, %v728_v54  ;;  %v1647_v54 = vld [vmem:[#allocation12] sm:$0xff] (!%p1356_p12)  }
 0x3a9   : > { %1461 = vmatpush3.bf16.msra.mxu0 %v2274_v3  ;;  %1464 = vmatprep.mubr.msk.bf16.mxu0 %vm1943_vm1, %v1942_v2 }
 0x3aa   : > { %1462 = vmatprep.subr.bf16.mxu0 %v1942_v2 }
 0x3ad   : > { %1463 = vmatpush3.bf16.msra.mxu0 %v2279_v5 }
 0x3ae   : > { %1476 = vmatprep.subr.bf16.mxu0 %v1942_v2 }
 0x47b   : > { %v768_v56 = vpop.f32.mrb[8].mxu0 }
 0x47c   : > { %v769_v57 = vadd.f32 %v768_v56, %v729_v55  ;;  %v1450_v58 = vpop.f32.mrb[9].mxu0  ;;  %v1945_v55 = vmov (!%p1356_p12), 0.0   ;;  %v1649_v56 = vld [vmem:[%s2422_s8] sm:$0xff] (!%p1356_p12)  }
 0x47d   : > { %v771_v59 = vpop.f32.mrb[10].mxu0 }
 0x47e   : > { %1637 = vtanh.f32 %v769_v57  ;;  %v1451_v60 = vpop.f32.mrb[11].mxu0  ;;  %v1650_v57 = vld [vmem:[%s2422_s8 + $0x8] sm:$0xff] (!%p1356_p12)   ;;  %v1651_v59 = vld [vmem:[%s2422_s8 + $0x10] sm:$0xff] (!%p1356_p12)  }
 0x47f   : > { %v1652_v60 = vld [vmem:[%s2422_s8 + $0x18] sm:$0xff] (!%p1356_p12)  }
 0x488   : > { %v1638_v61 = vpop.eup %1637 }
 0x489   : > { %v775_v62 = vsub.f32 %v1638_v61, %v727_v53  ;;  %v1653_v61 = vld [vmem:[%s2422_s8 + $0x20] sm:$0xff] (!%p1356_p12)  }
 0x48b   : > { %v777_v63 = vrot.slane %v775_v62, 2  ;;  %v1654_v62 = vld [vmem:[%s2422_s8 + $0x28] sm:$0xff] (!%p1356_p12)  }
 0x48d   : > { %v779_v0 = vmul.f32 %v777_v63, %v611_v25  ;;  %v1655_v63 = vld [vmem:[%s2422_s8 + $0x30] sm:$0xff] (!%p1356_p12)  }
 0x48f   : > { %v781_v1 = vrot.slane %v779_v0, 6  ;;  %v1656_v0 = vld [vmem:[%s2422_s8 + $0x38] sm:$0xff] (!%p1356_p12)  }
 0x491   : > { %v783_v4 = vadd.f32 %v781_v1, %v727_v53  ;;  %v1357_v1 = vld [vmem:[#allocation14] ss:$0 sm:$0xff] (!%p1356_p12) }
 0x493   : > { %v784_v6 = vpack.c.bf16 %v783_v4, %v783_v4 }
 0x495   : > { %1457 = vmatmul.mubr.msk.bf16.vlgmr.msra.gmra.mrb[8].mxu1 %vm562_vm3, %v784_v6 }
 0x496   : > { %1469 = vmatpush3.bf16.msra.mxu1 %v2274_v3  ;;  %1472 = vmatprep.mubr.msk.bf16.mxu1 %vm1943_vm1, %v1942_v2 }
 0x497   : > { %1470 = vmatprep.subr.bf16.mxu1 %v1942_v2 }
 0x49a   : > { %1471 = vmatpush3.bf16.msra.mxu1 %v2279_v5 }
 0x49b   : > { %1492 = vmatprep.subr.bf16.mxu1 (!%p1356_p12), %v1945_v55 }
 0x568   : > { %v822_v7 = vpop.f32.mrb[8].mxu1 }
 0x569   : > { %v823_v8 = vadd.f32 %v822_v7, %v2304_v16  ;;  %v1458_v9 = vpop.f32.mrb[9].mxu1 }
 0x56a   : > { %v825_v10 = vpop.f32.mrb[10].mxu1 }
 0x56b   : > { %1639 = vtanh.f32 %v823_v8  ;;  %v1459_v11 = vpop.f32.mrb[11].mxu1 }
 0x575   : > { %v1640_v12 = vpop.eup %1639 }
 0x576   : > { %v829_v13 = vsub.f32 %v1640_v12, %v783_v4  ;;  %v1361_v12 = vld [vmem:[%s2423_s9] ss:$0 sm:$0xff] (!%p1356_p12) }
 0x578   : > { %v835_v15 = vmul.f32 %v833_v14, %v829_v13 }
 0x57a   : > { %v836_v17 = vadd.f32 %v835_v15, %v783_v4 }
 0x57c   : > { %v837_v18 = vpack.c.bf16 %v836_v17, %v836_v17 }
 0x57e   : > { %1465 = vmatmul.mubr.msk.bf16.vlgmr.msra.gmra.mrb[12].mxu0 %vm562_vm3, %v837_v18 }
 0x57f   : > { %1477 = vmatpush3.bf16.msra.mxu0 %v2274_v3  ;;  %1480 = vmatprep.mubr.msk.bf16.mxu0 %vm1943_vm1, %v1942_v2 }
 0x580   : > { %1478 = vmatprep.subr.bf16.mxu0 %v1942_v2  ;;  %v895_v2 = vrot.slane %v2304_v16, 4  ;;  %v1648_v16 = vld [vmem:[#allocation12 + $0x8] sm:$0xff] (!%p1356_p12)  }
 0x583   : > { %1479 = vmatpush3.bf16.msra.mxu0 %v2279_v5 }
 0x584   : > { %1484 = vmatprep.subr.bf16.mxu0 (!%p1356_p12), %v1945_v55 }
 0x651   : > { %v878_v20 = vpop.f32.mrb[12].mxu0 }
 0x652   : > { %v879_v21 = vadd.f32 %v878_v20, %v839_v19  ;;  %v1466_v22 = vpop.f32.mrb[13].mxu0 }
 0x653   : > { %v881_v23 = vpop.f32.mrb[14].mxu0 }
 0x654   : > { %1641 = vtanh.f32 %v879_v21  ;;  %v1467_v24 = vpop.f32.mrb[15].mxu0 }
 0x65e   : > { %v1642_v25 = vpop.eup %1641 }
 0x65f   : > { %v885_v26 = vsub.f32 %v1642_v25, %v836_v17 }
 0x661   : > { %v887_v27 = vrot.slane %v885_v26, 6 }
 0x663   : > { %v889_v28 = vmul.f32 %v887_v27, %v833_v14 }
 0x665   : > { %v891_v3 = vrot.slane %v889_v28, 2 }
 0x667   : > { %v893_v29 = vadd.f32 %v891_v3, %v836_v17 }
 0x669   : > { %v894_v30 = vpack.c.bf16 %v893_v29, %v893_v29 }
 0x66b   : > { %1473 = vmatmul.mubr.msk.bf16.vlgmr.msra.gmra.mrb[12].mxu1 %vm562_vm3, %v894_v30 }
 0x66c   : > { %1508 = vmatprep.mubr.msk.bf16.mxu1 (!%p1356_p12), %vm1946_vm5, %v1945_v55  ;;  %1493 = vmatpush3.bf16.msra.mxu1 (!%p1356_p12), %v1649_v56 }
 0x66d   : > { %1494 = vmatprep.subr.bf16.mxu1 (!%p1356_p12), %v1945_v55 }
 0x670   : > { %1495 = vmatpush3.bf16.msra.mxu1 (!%p1356_p12), %v1650_v57 }
 0x671   : > { %1496 = vmatprep.subr.bf16.mxu1 (!%p1356_p12), %v1945_v55 }
 0x674   : > { %1497 = vmatpush3.bf16.msra.mxu1 (!%p1356_p12), %v1651_v59 }
 0x675   : > { %1498 = vmatprep.subr.bf16.mxu1 (!%p1356_p12), %v1945_v55 }
 0x678   : > { %1499 = vmatpush3.bf16.msra.mxu1 (!%p1356_p12), %v1652_v60 }
 0x679   : > { %1500 = vmatprep.subr.bf16.mxu1 (!%p1356_p12), %v1945_v55 }
 0x67c   : > { %1501 = vmatpush3.bf16.msra.mxu1 (!%p1356_p12), %v1653_v61 }
 0x67d   : > { %1502 = vmatprep.subr.bf16.mxu1 (!%p1356_p12), %v1945_v55 }
 0x680   : > { %1503 = vmatpush3.bf16.msra.mxu1 (!%p1356_p12), %v1654_v62 }
 0x681   : > { %1504 = vmatprep.subr.bf16.mxu1 (!%p1356_p12), %v1945_v55 }
 0x684   : > { %1505 = vmatpush3.bf16.msra.mxu1 (!%p1356_p12), %v1655_v63 }
 0x685   : > { %1506 = vmatprep.subr.bf16.mxu1 (!%p1356_p12), %v1945_v55 }
 0x688   : > { %1507 = vmatpush3.bf16.msra.mxu1 (!%p1356_p12), %v1656_v0 }
 0x73e   : > { %v934_v5 = vpop.f32.mrb[12].mxu1 }
 0x73f   : > { %v935_v31 = vadd.f32 %v934_v5, %v895_v2  ;;  %v1474_v32 = vpop.f32.mrb[13].mxu1 }
 0x740   : > { %v937_v33 = vpop.f32.mrb[14].mxu1 }
 0x741   : > { %1643 = vtanh.f32 %v935_v31  ;;  %v1475_v34 = vpop.f32.mrb[15].mxu1 }
 0x74b   : > { %v1644_v35 = vpop.eup %1643 }
 0x74c   : > { %v941_v36 = vsub.f32 %v1644_v35, %v893_v29 }
 0x74e   : > { %v943_v37 = vrot.slane %v941_v36, 4 }
 0x750   : > { %v945_v38 = vmul.f32 %v943_v37, %v833_v14 }
 0x752   : > { %v947_v39 = vrot.slane %v945_v38, 4 }
 0x754   : > { %v949_v40 = vadd.f32 %v947_v39, %v893_v29 }
 0x756   : > { %v950_v41 = vpack.c.bf16 %v949_v40, %v949_v40 }
 0x758   : > { %1481 = vmatmul.mubr.msk.bf16.vlgmr.msra.gmra.mrb[16].mxu0 %vm562_vm3, %v950_v41 }
 0x759   : > { %1485 = vmatpush3.bf16.msra.mxu0 (!%p1356_p12), %v1647_v54  ;;  %1488 = vmatprep.mubr.msk.bf16.mxu0 (!%p1356_p12), %vm1946_vm5, %v1945_v55 }
 0x75a   : > { %1486 = vmatprep.subr.bf16.mxu0 (!%p1356_p12), %v1945_v55 }
 0x75d   : > { %1487 = vmatpush3.bf16.msra.mxu0 (!%p1356_p12), %v1648_v16 }
 0x82b   : > { %v990_v43 = vpop.f32.mrb[16].mxu0 }
 0x82c   : > { %v991_v44 = vadd.f32 %v990_v43, %v951_v42  ;;  %v1482_v45 = vpop.f32.mrb[17].mxu0 }
 0x82d   : > { %v993_v46 = vpop.f32.mrb[18].mxu0 }
 0x82e   : > { %1645 = vtanh.f32 %v991_v44  ;;  %v1483_v47 = vpop.f32.mrb[19].mxu0 }
 0x838   : > { %v1646_v48 = vpop.eup %1645 }
 0x839   : > { %v997_v49 = vsub.f32 %v1646_v48, %v949_v40 }
 0x83b   : > { %v999_v50 = vrot.slane %v997_v49, 2 }
 0x83d   : > { %v1001_v51 = vmul.f32 %v999_v50, %v833_v14  ;;  %1011 = sbr.rel (%p1356_p12) target bundleno = 2550 (0x9f6), region = 96 }
 0x83f   : > { %v1003_v52 = vrot.slane %v1001_v51, 6 }
 0x841   : > { %v1005_v53 = vadd.f32 %v1003_v52, %v949_v40 }
 0x843   : > { %1007 = vst.msk [vmem:[#allocation2] sm:$0x3] %vm1006_vm4, %v1005_v53  ;;  %v1012_v58 = vpack.c.bf16 (!%p1356_p12), %v1005_v53, %v1005_v53 }
 0x845   : > { %1489 = vmatmul.mubr.msk.bf16.vlgmr.msra.gmra.mrb[0].mxu0 %vm562_vm3, %v1012_v58 }
 0x918   : > { %v1073_v4 = vpop.f32.mrb[0].mxu0 }
 0x919   : > { %v1074_v6 = vadd.f32 %v1357_v1, %v1073_v4  ;;  %v1490_v7 = vpop.f32.mrb[1].mxu0 }
 0x91a   : > { %v1076_v8 = vpop.f32.mrb[2].mxu0 }
 0x91b   : > { %v1079_v9 = vmax.f32 %v1074_v6, 0.0  ;;  %v1491_v10 = vpop.f32.mrb[3].mxu0 }
 0x91d   : > { %v1080_v11 = vpack.c.bf16 %v1079_v9, %v1079_v9 }
 0x91f   : > { %1509 = vmatmul.mubr.bf16.vlgmr.msra.gmra.mrb[0].mxu1 %v1080_v11 }
 0x9f2   : > { %v1186_v13 = vpop.f32.mrb[0].mxu1 }
 0x9f3   : > { %v1187_v14 = vadd.f32 %v1361_v12, %v1186_v13  ;;  %v1510_v15 = vpop.f32.mrb[1].mxu1 }
 0x9f4   : > { %v1189_v17 = vpop.f32.mrb[2].mxu1 }
 0x9f5   : > { %1192 = vst [vmem:[#allocation15] sm:$0x3] %v1187_v14  ;;  %v1511_v18 = vpop.f32.mrb[3].mxu1 }
 0x9f6 PF: > { %p1578_p0 = scmp.eq.s32.totalorder %s2024_s19, 1  ;;  %s1947_s12 = smov [#allocation15]  }
 0x9f7   : > { %s1200_s29 = sshll.u32 %s1947_s12, 4  ;;  %s1201_s29 = int_to_ptr.vmem [resolvable:$true] %s1200_s29 }
 0x9f8   : > { %s1855_s16 = scalar_lea.vmem %s1201_s29, 32  ;;  %p1862_p13 = scmp.lt.s32.totalorder %s1201_s29, %s1201_s29 }
 0x9f9   : > { %p1856_p5 = scmp.ne.s32.totalorder %s1201_s29, %s1855_s16  ;;  %p1863_p2 = scmp.lt.s32.totalorder %s1855_s16, %s1855_s16 }
 0x9fb   : > { %p1857_p8 = pnand %p1856_p5, %p1578_p0  ;;  %p1864_p9 = por %p1863_p2, %p1862_p13 }
 0x9fd   : > { %p1858_p7 = pneg %p1857_p8 }
 0x9ff   : > { %p1865_p6 = pnand %p1864_p9, %p1858_p7 }
 0xa01   : > { %1868 = shalt.err (!%p1865_p6)
}
 0xa02   : > { %s2447_s17 = sld [smem:[#allocation23_spill]] }
 0xa08   : > { %s1869_s18 = scalar_lea.hbm %s2447_s17, 32 }
 0xa09   : > { %p1870_p3 = scmp.ne.s32.totalorder %s2447_s17, %s1869_s18  ;;  %p1875_p11 = scmp.lt.u32.totalorder %s1869_s18, %s2447_s17 }
 0xa0b   : > { %p1871_p1 = pnand %p1870_p3, %p1578_p0 }
 0xa0d   : > { %p1872_p4 = pneg %p1871_p1 }
 0xa0f   : > { %p1877_p10 = pnand %p1875_p11, %p1872_p4 }
 0xa11   : > { %1880 = shalt.err (!%p1877_p10)
}
 0xa12   : > { %1539 = dma.vmem_to_hbm [thread:$0]  (%p1578_p0), %s1201_s29, 32, %s2447_s17, [#allocation5]  }
 0xa13   : > { %1914 = dma.done.wait (%p1578_p0), [#allocation5], 32  }
 0xa14   : > { %1916 = vsyncadd (%p1578_p0), [#allocation5], 4294967264 }
 0xa15 PF: > { %p24_p12 = scmp.ge.s32.totalorder %s2180_s11, 4   ;;  %s2448_s13 = smov %s1923_s14 }
 0xa16   : > { %s2449_s14 = smov %s1927_s15  ;;  %s2450_s15 = smov %s2192_s28 }
 0xa17   : > { %s2451_s16 = smov %s2180_s11  ;;  %26 = sbr.rel (!%p24_p12) target bundleno = 11 (0xb), region = 132 }
 0xa1e   :  { %1213 = vsyncpa [#allocation4], 1 }
 0xa1f   :  { %1215 = vsyncpa [#allocation4 + $0x1], 1 }
 0xa20   :  { %1216 = vsyncpa [#allocation7], 1 }
 0xa21   :  { %1217 = vsyncpa [#allocation10], 1 }
 0xa22   :  { %1218 = vsyncpa [#allocation13], 1 }
 0xa23   :  { %1219 = vsyncpa [#allocation5], 1 }
 0xa24   :  { %1221 = vsyncpa [#allocation5 + $0x1], 1 }

</bundles_post_ra>
